<compile_context>
chip_gen: v5e
topology: v5e:2x2
jax: 0.10.0
libtpu: 0.0.40
codegen_flags: <defaults>
</compile_context>

<pallas_src>
import functools

import jax
import jax.numpy as jnp
from jax.experimental import pallas as pl
from jax.experimental.pallas import tpu as pltpu


C_IN, C_OUT, K = 3, 8, 3
H_IN = W_IN = 30
H_CONV = W_CONV = H_IN - K + 1        # 28
H_POOL = W_POOL = H_CONV // 2         # 14
M_POOL = H_POOL * W_POOL              # 196 pool positions / image
M_PAD = 200                           # 196 padded to a multiple of 8
PATCH = K * K * C_IN                  # 27
FC_IN = C_OUT * M_POOL                # 1568
FC_OUT = 5
SPREAD = C_OUT * FC_OUT               # 40 = conv channels replicated per FC output
GROUP = 64                            # per-quadrant lane group (40 real + 24 zero pad)
N_LANES = 4 * GROUP                   # 256 conv-matmul output lanes


# ----------------------------------------------------------------------------
# Fused Pallas kernel: conv + maxpool + bias + ReLU + FC for a batch tile.
# ----------------------------------------------------------------------------
def _fused_cnn_kernel(b_tile, p_ref, w_ref, b_ref, fcw_ref, seg_ref, e2_ref,
                      fcb_ref, o_ref):
    """
    p_ref   : (b_tile*200, 108)  lane-packed quadrant patches (row = image*200 + pos)
    w_ref   : (108, 256)         block-diag, channel-spread conv weight
    b_ref   : (1, 64)            conv bias spread to (c*5+j) lanes
    fcw_ref : (b_tile*200, 64)   FC weight, permuted & tiled per image
    seg_ref : (b_tile, b_tile*200) per-image segment-sum matrix
    e2_ref  : (64, 5)            channel-group -> logit selector
    fcb_ref : (1, 5)             FC bias
    o_ref   : (1, b_tile, 5)     logits for this batch tile
    """
    # Conv for all 4 pool quadrants in one MXU matmul.
    y = jnp.dot(p_ref[...], w_ref[...],
                preferred_element_type=jnp.float32)            # (b*200, 256)

    # 2x2 max-pool = max over the 4 quadrant lane groups (64-aligned slices).
    pooled = jnp.maximum(
        jnp.maximum(y[:, 0:GROUP], y[:, GROUP:2 * GROUP]),
        jnp.maximum(y[:, 2 * GROUP:3 * GROUP], y[:, 3 * GROUP:4 * GROUP]))

    # Bias + ReLU (commutes with the max since the bias is quadrant-invariant).
    act = jnp.maximum(pooled + b_ref[...], 0.0)                # (b*200, 64)

    # FC: elementwise weight, per-image segment-sum (MXU), channel collapse (MXU).
    prod = act * fcw_ref[...]                                  # (b*200, 64)
    red = jnp.dot(seg_ref[...], prod,
                  preferred_element_type=jnp.float32)          # (b, 64)
    out = jnp.dot(red, e2_ref[...],
                  preferred_element_type=jnp.float32) + fcb_ref[...]
    o_ref[0] = out.astype(o_ref.dtype)                         # (b, 5)


# ----------------------------------------------------------------------------
# Wrapper glue (pure data movement) + pallas_call
# ----------------------------------------------------------------------------
def _packed_patches(x_nhwc):
    """(N,30,30,3) -> (N,196,108) im2col patches, 4 pool quadrants lane-packed.

    patches[n, hp*14+wp, q*27 + kh*9 + kw*3 + c] = x[n, 2hp+dh+kh, 2wp+dw+kw, c]
    with q = dh*2 + dw.  Pure slicing/concat/reshape in XLA.
    """
    n = x_nhwc.shape[0]
    groups = []
    for dh in range(2):
        for dw in range(2):
            cols = []
            for kh in range(K):
                for kw in range(K):
                    r0, c0 = dh + kh, dw + kw
                    sl = x_nhwc[:, r0:r0 + 2 * H_POOL:2,
                                c0:c0 + 2 * W_POOL:2, :]        # (N,14,14,3)
                    cols.append(sl)
            groups.append(jnp.concatenate(cols, axis=-1))       # (N,14,14,27)
    patches = jnp.concatenate(groups, axis=-1)                  # (N,14,14,108)
    return patches.reshape(n, M_POOL, 4 * PATCH)


def _pack_params(conv_w, conv_b, fc_w, fc_b, b_tile):
    f32 = jnp.float32
    # Conv weight HWIO -> (27, 8), replicate each channel 5x, pad group to 64,
    # block-diagonal over the 4 quadrants -> (108, 256).
    w_flat = conv_w.reshape(PATCH, C_OUT).astype(f32)
    w_spread = jnp.repeat(w_flat, FC_OUT, axis=1)                       # (27, 40)
    w_group = jnp.concatenate(
        [w_spread, jnp.zeros((PATCH, GROUP - SPREAD), f32)], axis=1)    # (27, 64)
    w_blk = jnp.kron(jnp.eye(4, dtype=f32), w_group)                    # (108, 256)

    b_spread = jnp.repeat(conv_b.astype(f32), FC_OUT)                   # (40,)
    b_blk = jnp.concatenate(
        [b_spread, jnp.zeros((GROUP - SPREAD,), f32)])[None]            # (1, 64)

    # FC weight: PyTorch flatten order (c, h, w) -> kernel order (m, c*5+j),
    # zero rows for the 4 padded pool positions, then tile per image in the tile.
    fcw = fc_w.astype(f32).reshape(C_OUT, M_POOL, FC_OUT)               # (8,196,5)
    fcw = jnp.transpose(fcw, (1, 0, 2)).reshape(M_POOL, SPREAD)         # (196, 40)
    fcw = jnp.pad(fcw, ((0, M_PAD - M_POOL), (0, GROUP - SPREAD)))      # (200, 64)
    fcw_big = jnp.tile(fcw, (b_tile, 1))                                # (b*200, 64)

    # Per-image segment-sum matrix and channel-group -> logit selector.
    seg = jnp.kron(jnp.eye(b_tile, dtype=f32), jnp.ones((1, M_PAD), f32))
    e2 = jnp.concatenate(
        [jnp.tile(jnp.eye(FC_OUT, dtype=f32), (C_OUT, 1)),
         jnp.zeros((GROUP - SPREAD, FC_OUT), f32)], axis=0)             # (64, 5)
    fcb = fc_b.astype(f32)[None]                                        # (1, 5)
    return w_blk, b_blk, fcw_big, seg, e2, fcb


@jax.jit
def simple_cnn_forward(x_nchw, conv_w, conv_b, fc_w, fc_b):
    # NCHW (PyTorch) -> NHWC (channels on the lane axis).
    x = jnp.transpose(x_nchw, (0, 2, 3, 1)).astype(jnp.float32)
    n = x.shape[0]

    # Batch tile: amortize per-step cost, keep >=2 grid steps when possible,
    # and stay comfortably inside the scoped-VMEM budget on all generations.
    b_tile = max(1, min(16, (n + 1) // 2))
    n_pad = ((n + b_tile - 1) // b_tile) * b_tile
    grid = n_pad // b_tile

    patches = _packed_patches(x)                                        # (N,196,108)
    patches = jnp.pad(patches,
                      ((0, n_pad - n), (0, M_PAD - M_POOL), (0, 0)))    # (Np,200,108)
    patches = patches.reshape(n_pad * M_PAD, 4 * PATCH)                 # (Np*200,108)

    w_blk, b_blk, fcw_big, seg, e2, fcb = _pack_params(
        conv_w, conv_b, fc_w, fc_b, b_tile)

    kernel = functools.partial(_fused_cnn_kernel, b_tile)
    out = pl.pallas_call(
        kernel,
        out_shape=jax.ShapeDtypeStruct((grid, b_tile, FC_OUT), jnp.float32),
        grid_spec=pltpu.PrefetchScalarGridSpec(
            num_scalar_prefetch=0,
            grid=(grid,),
            in_specs=[
                pl.BlockSpec((b_tile * M_PAD, 4 * PATCH), lambda i: (i, 0)),
                pl.BlockSpec((4 * PATCH, N_LANES), lambda i: (0, 0)),
                pl.BlockSpec((1, GROUP), lambda i: (0, 0)),
                pl.BlockSpec((b_tile * M_PAD, GROUP), lambda i: (0, 0)),
                pl.BlockSpec((b_tile, b_tile * M_PAD), lambda i: (0, 0)),
                pl.BlockSpec((GROUP, FC_OUT), lambda i: (0, 0)),
                pl.BlockSpec((1, FC_OUT), lambda i: (0, 0)),
            ],
            out_specs=pl.BlockSpec((1, b_tile, FC_OUT), lambda i: (i, 0, 0)),
        ),
        compiler_params=pltpu.CompilerParams(
            dimension_semantics=("parallel",),
            vmem_limit_bytes=32 * 1024 * 1024,
        ),
    )(patches, w_blk, b_blk, fcw_big, seg, e2, fcb)
    return out.reshape(n_pad, FC_OUT)[:n]


# ----------------------------------------------------------------------------
# Pure-JAX reference (correctness check only)
# ----------------------------------------------------------------------------
def reference_forward(x_nchw, conv_w, conv_b, fc_w, fc_b):
    x = jnp.transpose(x_nchw, (0, 2, 3, 1)).astype(jnp.float32)
    y = jax.lax.conv_general_dilated(
        x, conv_w, (1, 1), 'VALID',
        dimension_numbers=('NHWC', 'HWIO', 'NHWC'))
    y = jnp.maximum(y + conv_b, 0.0)
    y = jax.lax.reduce_window(y, -jnp.inf, jax.lax.max,
                              (1, 2, 2, 1), (1, 2, 2, 1), 'VALID')   # (N,14,14,8)
    flat = jnp.transpose(y, (0, 3, 1, 2)).reshape(x.shape[0], -1)    # NCHW flatten
    return flat @ fc_w + fc_b


# ----------------------------------------------------------------------------
if __name__ == "__main__":
    key = jax.random.PRNGKey(0)
    kx, kw, kb, kfw, kfb = jax.random.split(key, 5)

    # Deterministic synthetic parameters matching SimpleCNN shapes.
    conv_w = jax.random.normal(kw, (K, K, C_IN, C_OUT), jnp.float32) * 0.1  # HWIO
    conv_b = jax.random.normal(kb, (C_OUT,), jnp.float32) * 0.1
    fc_w = jax.random.normal(kfw, (FC_IN, FC_OUT), jnp.float32) * 0.05
    fc_b = jax.random.normal(kfb, (FC_OUT,), jnp.float32) * 0.05

    for batch in (2, 20):  # exercises both the tiny (B_TILE=1) and batched path
        xb = jax.random.normal(jax.random.fold_in(kx, batch),
                               (batch, C_IN, H_IN, W_IN), jnp.float32)
        out = jax.block_until_ready(
            simple_cnn_forward(xb, conv_w, conv_b, fc_w, fc_b))
        assert out.shape == (batch, FC_OUT), out.shape

        ref = reference_forward(xb, conv_w, conv_b, fc_w, fc_b)
        max_err = float(jnp.max(jnp.abs(out - ref)))
        if max_err > 2e-2:
            raise AssertionError(
                f"Pallas result mismatch at batch={batch}, max abs err = {max_err}")

    print("KERNEL_OK")
</pallas_src>

<mosaic_0001>
module attributes {stable_mosaic.version = 11 : i64} {
  func.func @_fused_cnn_kernel(%arg0: i32, %arg1: memref<200x108xf32, #tpu.memory_space<vmem>>, %arg2: memref<108x256xf32, #tpu.memory_space<vmem>>, %arg3: memref<1x64xf32, #tpu.memory_space<vmem>>, %arg4: memref<200x64xf32, #tpu.memory_space<vmem>>, %arg5: memref<1x200xf32, #tpu.memory_space<vmem>>, %arg6: memref<64x5xf32, #tpu.memory_space<vmem>>, %arg7: memref<1x5xf32, #tpu.memory_space<vmem>>, %arg8: memref<1x1x5xf32, #tpu.memory_space<vmem>>) attributes {dimension_semantics = [#tpu.dimension_semantics<parallel>], iteration_bounds = array<i64: 2>, scalar_prefetch = 0 : i64, scratch_operands = 0 : i64, tpu.core_type = #tpu.core_type<tc>, window_params = [{transform_indices = @transform_0, window_bounds = array<i64: 200, 108>}, {pipeline_mode = #tpu.pipeline_mode<synchronous>, transform_indices = @transform_1, window_bounds = array<i64: 108, 256>}, {pipeline_mode = #tpu.pipeline_mode<synchronous>, transform_indices = @transform_2, window_bounds = array<i64: 1, 64>}, {pipeline_mode = #tpu.pipeline_mode<synchronous>, transform_indices = @transform_3, window_bounds = array<i64: 200, 64>}, {pipeline_mode = #tpu.pipeline_mode<synchronous>, transform_indices = @transform_4, window_bounds = array<i64: 1, 200>}, {pipeline_mode = #tpu.pipeline_mode<synchronous>, transform_indices = @transform_5, window_bounds = array<i64: 64, 5>}, {pipeline_mode = #tpu.pipeline_mode<synchronous>, transform_indices = @transform_6, window_bounds = array<i64: 1, 5>}, {transform_indices = @transform_7, window_bounds = array<i64: 1, 1, 5>}]} {
    %c0 = arith.constant 0 : index
    %c0_0 = arith.constant 0 : index
    %0 = vector.load %arg1[%c0, %c0_0] : memref<200x108xf32, #tpu.memory_space<vmem>>, vector<200x108xf32>
    %c0_1 = arith.constant 0 : index
    %c0_2 = arith.constant 0 : index
    %1 = vector.load %arg2[%c0_1, %c0_2] : memref<108x256xf32, #tpu.memory_space<vmem>>, vector<108x256xf32>
    %cst = arith.constant dense<0.000000e+00> : vector<200x256xf32>
    %2 = tpu.matmul %0, %1, %cst {dimension_numbers = #tpu.dot_dimension_numbers<[1], [0], [0], [1], [0, 0, 1, 1], [], []>} : vector<200x108xf32>, vector<108x256xf32>, vector<200x256xf32> -> vector<200x256xf32>
    %3 = vector.extract_strided_slice %2 {offsets = [0, 0], sizes = [200, 64], strides = [1, 1]} : vector<200x256xf32> to vector<200x64xf32>
    %4 = vector.extract_strided_slice %2 {offsets = [0, 64], sizes = [200, 64], strides = [1, 1]} : vector<200x256xf32> to vector<200x64xf32>
    %5 = arith.maximumf %3, %4 : vector<200x64xf32>
    %6 = vector.extract_strided_slice %2 {offsets = [0, 128], sizes = [200, 64], strides = [1, 1]} : vector<200x256xf32> to vector<200x64xf32>
    %7 = vector.extract_strided_slice %2 {offsets = [0, 192], sizes = [200, 64], strides = [1, 1]} : vector<200x256xf32> to vector<200x64xf32>
    %8 = arith.maximumf %6, %7 : vector<200x64xf32>
    %9 = arith.maximumf %5, %8 : vector<200x64xf32>
    %c0_3 = arith.constant 0 : index
    %c0_4 = arith.constant 0 : index
    %10 = vector.load %arg3[%c0_3, %c0_4] : memref<1x64xf32, #tpu.memory_space<vmem>>, vector<1x64xf32>
    %11 = vector.broadcast %10 : vector<1x64xf32> to vector<200x64xf32>
    %12 = arith.addf %9, %11 : vector<200x64xf32>
    %cst_5 = arith.constant 0.000000e+00 : f32
    %13 = vector.broadcast %cst_5 : f32 to vector<200x64xf32>
    %14 = arith.maximumf %12, %13 : vector<200x64xf32>
    %c0_6 = arith.constant 0 : index
    %c0_7 = arith.constant 0 : index
    %15 = vector.load %arg4[%c0_6, %c0_7] : memref<200x64xf32, #tpu.memory_space<vmem>>, vector<200x64xf32>
    %16 = arith.mulf %14, %15 : vector<200x64xf32>
    %c0_8 = arith.constant 0 : index
    %c0_9 = arith.constant 0 : index
    %17 = vector.load %arg5[%c0_8, %c0_9] : memref<1x200xf32, #tpu.memory_space<vmem>>, vector<1x200xf32>
    %cst_10 = arith.constant dense<0.000000e+00> : vector<1x64xf32>
    %18 = tpu.matmul %17, %16, %cst_10 {dimension_numbers = #tpu.dot_dimension_numbers<[1], [0], [0], [1], [0, 0, 1, 1], [], []>} : vector<1x200xf32>, vector<200x64xf32>, vector<1x64xf32> -> vector<1x64xf32>
    %c0_11 = arith.constant 0 : index
    %c0_12 = arith.constant 0 : index
    %19 = vector.load %arg6[%c0_11, %c0_12] : memref<64x5xf32, #tpu.memory_space<vmem>>, vector<64x5xf32>
    %cst_13 = arith.constant dense<0.000000e+00> : vector<1x5xf32>
    %20 = tpu.matmul %18, %19, %cst_13 {dimension_numbers = #tpu.dot_dimension_numbers<[1], [0], [0], [1], [0, 0, 1, 1], [], []>} : vector<1x64xf32>, vector<64x5xf32>, vector<1x5xf32> -> vector<1x5xf32>
    %c0_14 = arith.constant 0 : index
    %c0_15 = arith.constant 0 : index
    %21 = vector.load %arg7[%c0_14, %c0_15] : memref<1x5xf32, #tpu.memory_space<vmem>>, vector<1x5xf32>
    %22 = arith.addf %20, %21 : vector<1x5xf32>
    %c0_16 = arith.constant 0 : index
    %c0_17 = arith.constant 0 : index
    %c0_18 = arith.constant 0 : index
    %23 = vector.load %arg8[%c0_16, %c0_17, %c0_18] : memref<1x1x5xf32, #tpu.memory_space<vmem>>, vector<1x1x5xf32>
    %24 = vector.shape_cast %23 : vector<1x1x5xf32> to vector<1x5xf32>
    %25 = vector.shape_cast %22 : vector<1x5xf32> to vector<1x1x5xf32>
    tpu.vector_store %arg8[%c0_16, %c0_17, %c0_18], %25 {strides = array<i32>} : memref<1x1x5xf32, #tpu.memory_space<vmem>>, vector<1x1x5xf32>,
    return
  }
  func.func @transform_0(%arg0: i32) -> (i32, i32) {
    %c0_i32 = arith.constant 0 : i32
    %c0_i32_0 = arith.constant 0 : i32
    return %arg0, %c0_i32 : i32, i32
  }
  func.func @transform_1(%arg0: i32) -> (i32, i32) {
    %c0_i32 = arith.constant 0 : i32
    %c0_i32_0 = arith.constant 0 : i32
    %c0_i32_1 = arith.constant 0 : i32
    return %c0_i32, %c0_i32_0 : i32, i32
  }
  func.func @transform_2(%arg0: i32) -> (i32, i32) {
    %c0_i32 = arith.constant 0 : i32
    %c0_i32_0 = arith.constant 0 : i32
    %c0_i32_1 = arith.constant 0 : i32
    return %c0_i32, %c0_i32_0 : i32, i32
  }
  func.func @transform_3(%arg0: i32) -> (i32, i32) {
    %c0_i32 = arith.constant 0 : i32
    %c0_i32_0 = arith.constant 0 : i32
    %c0_i32_1 = arith.constant 0 : i32
    return %c0_i32, %c0_i32_0 : i32, i32
  }
  func.func @transform_4(%arg0: i32) -> (i32, i32) {
    %c0_i32 = arith.constant 0 : i32
    %c0_i32_0 = arith.constant 0 : i32
    %c0_i32_1 = arith.constant 0 : i32
    return %c0_i32, %c0_i32_0 : i32, i32
  }
  func.func @transform_5(%arg0: i32) -> (i32, i32) {
    %c0_i32 = arith.constant 0 : i32
    %c0_i32_0 = arith.constant 0 : i32
    %c0_i32_1 = arith.constant 0 : i32
    return %c0_i32, %c0_i32_0 : i32, i32
  }
  func.func @transform_6(%arg0: i32) -> (i32, i32) {
    %c0_i32 = arith.constant 0 : i32
    %c0_i32_0 = arith.constant 0 : i32
    %c0_i32_1 = arith.constant 0 : i32
    return %c0_i32, %c0_i32_0 : i32, i32
  }
  func.func @transform_7(%arg0: i32) -> (i32, i32, i32) {
    %c0_i32 = arith.constant 0 : i32
    %c0_i32_0 = arith.constant 0 : i32
    %c0_i32_1 = arith.constant 0 : i32
    return %arg0, %c0_i32, %c0_i32_0 : i32, i32, i32
  }
}

</mosaic_0001>

<bundles_post_ra>
// kernel: tile.9
= control target key start
LH: loop header
LB: loop body
LE: loop exit
PB: predicated region body
PF: predicated region fallthrough
CT: control target
= control target key end

     0   :  { %vm5_vm0 = vcmask 1044484   ;;  %s101_s14 = smov 35   ;;  %s102_s15 = smov 25   ;;  %vm7_vm1 = vcmask 39936   ;;  %vm17_vm2 = vcmask 326936   ;;  %vm27_vm3 = vcmask 285936   ;;  %s198_s0 = inlined_call_operand.vmem [shape: f32[8,5,5], index: 0, kind: input, shape index: {}]   ;;  %s199_s1 = inlined_call_operand.vmem [shape: f32[40,5], index: 1, kind: output, shape index: {}]  }
   0x1   :  { %v80_v0 = vld [vmem:[%s198_s0 + $0x7] ss:$8 sm:$0xf]   ;;  %v84_v3 = vld [vmem:[%s198_s0 + $0x5] ss:$8 sm:$0xf]  }
   0x2   :  { %v81_v1 = vld [vmem:[%s198_s0 + $0x23] sm:$0x10]   ;;  %v85_v4 = vld [vmem:[%s198_s0 + $0x21] sm:$0x10]   ;;  %v83_v7 = vld [vmem:[%s198_s0 + $0x22] sm:$0x10]  }
   0x3   :  { %v14_v2 = vsel %vm5_vm0, %v81_v1, %v80_v0  ;;  %v34_v5 = vsel %vm5_vm0, %v85_v4, %v84_v3  ;;  %v82_v6 = vld [vmem:[%s198_s0 + $0x6] ss:$8 sm:$0xf]   ;;  %v86_v8 = vld [vmem:[%s198_s0 + $0x4] ss:$8 sm:$0xf]  }
   0x4   :  { %15 = vrot.lane.b32.xlu0 %v14_v2, %s101_s14  ;;  %35 = vrot.lane.b32.xlu1 %v34_v5, %s102_s15  ;;  %v87_v9 = vld [vmem:[%s198_s0 + $0x20] sm:$0x10]   ;;  %v88_v10 = vld [vmem:[%s198_s0 + $0x3] ss:$8 sm:$0xf]   ;;  %v24_v13 = vsel %vm5_vm0, %v83_v7, %v82_v6  ;;  %s103_s28 = smov 15  }
   0x5   :  { %v89_v11 = vld [vmem:[%s198_s0 + $0x1f] sm:$0x10]   ;;  %v44_v14 = vsel %vm5_vm0, %v87_v9, %v86_v8  ;;  %v90_v15 = vld [vmem:[%s198_s0 + $0x2] ss:$8 sm:$0xf]   ;;  %s104_s4 = smov 30  }
   0x6   :  { %v54_v12 = vsel %vm5_vm0, %v89_v11, %v88_v10  ;;  %v91_v16 = vld [vmem:[%s198_s0 + $0x1e] sm:$0x10]   ;;  %s105_s5 = smov 20   ;;  %v92_v17 = vld [vmem:[%s198_s0 + $0x1] ss:$8 sm:$0xf]  }
   0x7   :  { %55 = vrot.lane.b32.xlu2 %v54_v12, %s103_s28  ;;  %v93_v18 = vld [vmem:[%s198_s0 + $0x1d] sm:$0x10]   ;;  %v64_v19 = vsel %vm5_vm0, %v91_v16, %v90_v15  ;;  %s106_s10 = smov 10   ;;  %s107_s11 = smov 5   ;;  %v79_v22 = vld [vmem:[%s198_s0 + $0x1c] sm:$0x10]  }
   0x8   :  { %v74_v20 = vsel %vm5_vm0, %v93_v18, %v92_v17  ;;  %v2_v21 = vld [vmem:[%s198_s0] ss:$8 sm:$0xf]   ;;  %vm37_vm4 = vcmask 244936   ;;  %vm47_vm5 = vcmask 203936   ;;  %vm57_vm6 = vcmask 162936  }
   0x9   :  { %v6_v23 = vsel %vm5_vm0, %v79_v22, %v2_v21  ;;  %vm67_vm7 = vcmask 121936   ;;  %vm77_vm8 = vcmask 80936  }
   0xa   :  { %8 = vst.msk [vmem:[%s199_s1] sm:$0x1f] %vm7_vm1, %v6_v23  }
   0xc   :  { %25 = vrot.lane.b32.xlu0 %v24_v13, %s104_s4  ;;  %45 = vrot.lane.b32.xlu1 %v44_v14, %s105_s5 }
   0xf   :  { %65 = vrot.lane.b32.xlu2 %v64_v19, %s106_s10 }
  0x14   :  { %75 = vrot.lane.b32.xlu0 %v74_v20, %s107_s11 }
  0x61   :  { %v56_v24 = vpop.permute.xlu2 %55  }
  0x69   :  { %v66_v25 = vpop.permute.xlu2 %65  }
  0x76   :  { %v16_v26 = vpop.permute.xlu0 %15   ;;  %v36_v27 = vpop.permute.xlu1 %35  }
  0x77   :  { %18 = vst.msk [vmem:[%s199_s1] sm:$0x1f] %vm17_vm2, %v16_v26  }
  0x7e   :  { %v26_v28 = vpop.permute.xlu0 %25   ;;  %v46_v29 = vpop.permute.xlu1 %45  }
  0x7f   :  { %28 = vst.msk [vmem:[%s199_s1] sm:$0x1f] %vm27_vm3, %v26_v28  }
  0x80   :  { %38 = vst.msk [vmem:[%s199_s1] sm:$0x1f] %vm37_vm4, %v36_v27  }
  0x81   :  { %48 = vst.msk [vmem:[%s199_s1] sm:$0x1f] %vm47_vm5, %v46_v29  }
  0x82   :  { %58 = vst.msk [vmem:[%s199_s1] sm:$0x1f] %vm57_vm6, %v56_v24  }
  0x83   :  { %68 = vst.msk [vmem:[%s199_s1] sm:$0x1f] %vm67_vm7, %v66_v25  }
  0x86   :  { %v76_v30 = vpop.permute.xlu0 %75  }
  0x87   :  { %78 = vst.msk [vmem:[%s199_s1] sm:$0x1f] %vm77_vm8, %v76_v30  }

// kernel: simple_cnn_forward.1
= control target key start
LH: loop header
LB: loop body
LE: loop exit
PB: predicated region body
PF: predicated region fallthrough
CT: control target
= control target key end

     0   :  { %12 = vsyncpa [#allocation3], 0  ;;  %s2035_s0 = inlined_call_operand.vmem [shape: f32[400,108], index: 0, kind: input, shape index: {}]   ;;  %s2036_s1 = inlined_call_operand.vmem [shape: f32[108,256], index: 1, kind: input, shape index: {}]   ;;  %s2037_s2 = inlined_call_operand.vmem [shape: f32[1,64], index: 2, kind: input, shape index: {}]   ;;  %s2038_s3 = inlined_call_operand.vmem [shape: f32[200,64], index: 3, kind: input, shape index: {}]   ;;  %s2039_s4 = inlined_call_operand.vmem [shape: f32[1,200], index: 4, kind: input, shape index: {}]   ;;  %s2040_s5 = inlined_call_operand.vmem [shape: f32[64,5], index: 5, kind: input, shape index: {}]   ;;  %s2041_s6 = inlined_call_operand.vmem [shape: f32[1,5], index: 6, kind: input, shape index: {}]   ;;  %s2042_s7 = inlined_call_operand.hbm [shape: f32[2,1,5], index: 7, kind: output, shape index: {}]  }
   0x1   :  { %14 = vsyncpa [#allocation3 + $0x1], 0  ;;  %s1363_s24 = smov 0   ;;  %s1365_s25 = smov 0  }
   0x2   :  { %s1367_s26 = smov 0   ;;  %s1369_s27 = smov 0  }
   0x3 LB: > { %s1384_s28 = sadd.s32 4294967295, %s1320_s27   ;;  %s1128_s29 = sadd.s32 4294967294, %s1320_s27   ;;  %s1320_s27 = sphi %s1369_s27, %s2076_s27   ;;  %s1316_s26 = sphi %s1367_s26, %s2075_s26   ;;  %s1312_s25 = sphi %s1365_s25, %s2074_s25   ;;  %s1308_s24 = sphi %s1363_s24, %s2073_s24  }
   0x4   : > { %s1388_s30 = sadd.s32 1, %s1320_s27   ;;  %s179_s8 = sadd.s32 1, %s1316_s26 }
   0x5   : > { %s176_s9 = ssub.s32 %s1320_s27, %s1388_s30  ;;  %p189_p0 = scmp.ne.s32.totalorder %s1316_s26, %s1312_s25 }
   0x6   : > { %p177_p1 = scmp.eq.s32.totalorder %s176_s9, 0  ;;  %p190_p2 = scmp.eq.s32.totalorder %s1384_s28, 1 }
   0x7   : > { %p195_p3 = scmp.ne.s32.totalorder %s1312_s25, %s1308_s24  ;;  %p196_p4 = scmp.eq.s32.totalorder %s1128_s29, 1 }
   0x8   : > { %s1399_s10 = scalar_select %p177_p1, %s1316_s26, %s179_s8  }
   0x9   : > { %p1401_p5 = por %p190_p2, %p189_p0  ;;  %p1405_p6 = por %p196_p4, %p195_p3 }
   0xa   : > { %p1131_p7 = scmp.ge.s32.totalorder %s1320_s27, 1  ;;  %p241_p8 = scmp.lt.s32.totalorder %s1320_s27, 3 }
   0xc   : > { %p242_p9 = pnand %p1131_p7, %p241_p8 }
   0xe   : > { %245 = sbr.rel (%p242_p9) target bundleno = 715 (0x2cb), region = 48 }
  0x13   : > { %v329_v0 = vld [vmem:[%s2036_s1 + $0xd0] sm:$0xf]  ;;  %vm407_vm0 = vcmask 1043456   ;;  %v330_v1 = vld [vmem:[%s2036_s1 + $0xd8] sm:$0xf]  ;;  %v327_v2 = vld [vmem:[%s2036_s1 + $0xc0] sm:$0xff]  ;;  %s1069_s29 = scalar_lea.hbm %s2042_s7, %s1384_s28 }
  0x14   : > { %1133 = vmatpush.msk.msra.mxu0 %vm407_vm0, %v329_v0  ;;  %1189 = vmatpush.msk.msra.mxu2 %vm407_vm0, %v329_v0  ;;  %v328_v3 = vld [vmem:[%s2036_s1 + $0xc8] sm:$0xff]  ;;  %v325_v4 = vld [vmem:[%s2036_s1 + $0xb0] sm:$0xff]  ;;  %v326_v5 = vld [vmem:[%s2036_s1 + $0xb8] sm:$0xff]  ;;  %s272_s19 = smul.u32 25, %s1384_s28  ;;  %vm331_vm1 = vcmask 883712   ;;  %s1322_s20 = smov 64  }
  0x15   : > { %1159 = vmatpush.msk.msra.mxu1 %vm407_vm0, %v330_v1  ;;  %1203 = vmatpush.msk.msra.mxu3 %vm407_vm0, %v330_v1  ;;  %v323_v6 = vld [vmem:[%s2036_s1 + $0xa0] sm:$0xff]  ;;  %v324_v7 = vld [vmem:[%s2036_s1 + $0xa8] sm:$0xff]  ;;  %v321_v8 = vld [vmem:[%s2036_s1 + $0x90] sm:$0xff]  ;;  %vm982_vm2 = vcmask 588800   ;;  %vm1034_vm3 = vcmask 523264   ;;  %s270_s21 = sand.u32 1, %s1312_s25  }
  0x16   : > { %417 = vmatpush.msra.mxu0 %v327_v2  ;;  %1190 = vmatpush.msra.mxu2 %v327_v2  ;;  %v322_v9 = vld [vmem:[%s2036_s1 + $0x98] sm:$0xff]  ;;  %v319_v10 = vld [vmem:[%s2036_s1 + $0x80] sm:$0xff]  ;;  %v320_v11 = vld [vmem:[%s2036_s1 + $0x88] sm:$0xff]  ;;  %p273_p10 = scmp.lt.s32.totalorder %s272_s19, 49  ;;  %s1073_s14 = sshll.u32 %s1069_s29, 4  ;;  %vm1058_vm4 = vcmask 32768   ;;  %s1074_s14 = int_to_ptr.hbm [resolvable:$true] %s1073_s14 }
  0x17   : > { %509 = vmatpush.msra.mxu1 %v328_v3  ;;  %1204 = vmatpush.msra.mxu3 %v328_v3  ;;  %v317_v12 = vld [vmem:[%s2036_s1 + $0x70] sm:$0xff]  ;;  %v318_v13 = vld [vmem:[%s2036_s1 + $0x78] sm:$0xff]  ;;  %v315_v14 = vld [vmem:[%s2036_s1 + $0x60] sm:$0xff]  ;;  %s1061_s15 = scalar_lea.sflag [#allocation3], %s270_s21  ;;  %s1272_s16 = sshra.s32 %s1074_s14, 4  ;;  %s1273_s16 = int_to_ptr.hbm [resolvable:$true] %s1272_s16 }
  0x18   : > { %418 = vmatpush.msra.mxu0 %v325_v4  ;;  %1191 = vmatpush.msra.mxu2 %v325_v4  ;;  %v316_v15 = vld [vmem:[%s2036_s1 + $0x68] sm:$0xff]  ;;  %v313_v16 = vld [vmem:[%s2036_s1 + $0x50] sm:$0xff]  ;;  %v314_v17 = vld [vmem:[%s2036_s1 + $0x58] sm:$0xff]  ;;  %s2078_s19 = smov (!%p273_p10, %s272_s19), 49  ;;  %s1274_s18 = scalar_lea.hbm %s1273_s16, 1 }
  0x19   : > { %510 = vmatpush.msra.mxu1 %v326_v5  ;;  %1205 = vmatpush.msra.mxu3 %v326_v5  ;;  %v311_v18 = vld [vmem:[%s2036_s1 + $0x40] sm:$0xff]  ;;  %v312_v19 = vld [vmem:[%s2036_s1 + $0x48] sm:$0xff]  ;;  %v309_v20 = vld [vmem:[%s2036_s1 + $0x30] sm:$0xff]  ;;  %s1132_s17 = sshll.u32 %s2078_s19, 3  ;;  %p1275_p11 = scmp.ne.s32.totalorder %s1273_s16, %s1274_s18 }
  0x1a   : > { %419 = vmatpush.msra.mxu0 %v323_v6  ;;  %1192 = vmatpush.msra.mxu2 %v323_v6  ;;  %v310_v21 = vld [vmem:[%s2036_s1 + $0x38] sm:$0xff]  ;;  %v307_v22 = vld [vmem:[%s2036_s1 + $0x20] sm:$0xff]  ;;  %v308_v23 = vld [vmem:[%s2036_s1 + $0x28] sm:$0xff]  ;;  %s1490_s9 = scalar_lea.vmem %s2035_s0, %s1132_s17  ;;  %p1279_p0 = scmp.lt.s32.totalorder %s1273_s16, %s2042_s7 }
  0x1b   : > { %511 = vmatpush.msra.mxu1 %v324_v7  ;;  %1206 = vmatpush.msra.mxu3 %v324_v7  ;;  %v305_v24 = vld [vmem:[%s2036_s1 + $0x10] sm:$0xff]  ;;  %v306_v25 = vld [vmem:[%s2036_s1 + $0x18] sm:$0xff]  ;;  %v303_v26 = vld [vmem:[%s2036_s1] sm:$0xff]  ;;  %p1276_p12 = pnand %p1275_p11, %p1401_p5 }
  0x1c   : > { %420 = vmatpush.msra.mxu0 %v321_v8  ;;  %1193 = vmatpush.msra.mxu2 %v321_v8  ;;  %v304_v27 = vld [vmem:[%s2036_s1 + $0x8] sm:$0xff]  ;;  %v278_v28 = vld [vmem:[%s1490_s9] sm:$0xff]  ;;  %v292_v29 = vld [vmem:[%s1490_s9 + $0x70] sm:$0xff] }
  0x1d   : > { %512 = vmatpush.msra.mxu1 %v322_v9  ;;  %1207 = vmatpush.msra.mxu3 %v322_v9  ;;  %v279_v30 = vld [vmem:[%s1490_s9 + $0x8] sm:$0xff]  ;;  %v293_v31 = vld [vmem:[%s1490_s9 + $0x78] sm:$0xff]  ;;  %v280_v32 = vld [vmem:[%s1490_s9 + $0x10] sm:$0xff]  ;;  %p1277_p13 = pneg %p1276_p12 }
  0x1e   : > { %421 = vmatpush.msra.mxu0 %v319_v10  ;;  %1194 = vmatpush.msra.mxu2 %v319_v10  ;;  %v294_v33 = vld [vmem:[%s1490_s9 + $0x80] sm:$0xff]  ;;  %v281_v34 = vld [vmem:[%s1490_s9 + $0x18] sm:$0xff]  ;;  %v295_v35 = vld [vmem:[%s1490_s9 + $0x88] sm:$0xff] }
  0x1f   : > { %513 = vmatpush.msra.mxu1 %v320_v11  ;;  %1208 = vmatpush.msra.mxu3 %v320_v11  ;;  %v282_v36 = vld [vmem:[%s1490_s9 + $0x20] sm:$0xff]  ;;  %v296_v37 = vld [vmem:[%s1490_s9 + $0x90] sm:$0xff]  ;;  %v283_v38 = vld [vmem:[%s1490_s9 + $0x28] sm:$0xff] }
  0x20   : > { %422 = vmatpush.msra.mxu0 %v317_v12  ;;  %1195 = vmatpush.msra.mxu2 %v317_v12  ;;  %v297_v39 = vld [vmem:[%s1490_s9 + $0x98] sm:$0xff]  ;;  %v284_v40 = vld [vmem:[%s1490_s9 + $0x30] sm:$0xff]  ;;  %v298_v41 = vld [vmem:[%s1490_s9 + $0xa0] sm:$0xff] }
  0x21   : > { %514 = vmatpush.msra.mxu1 %v318_v13  ;;  %1209 = vmatpush.msra.mxu3 %v318_v13  ;;  %v285_v42 = vld [vmem:[%s1490_s9 + $0x38] sm:$0xff]  ;;  %v299_v43 = vld [vmem:[%s1490_s9 + $0xa8] sm:$0xff]  ;;  %v286_v44 = vld [vmem:[%s1490_s9 + $0x40] sm:$0xff] }
  0x22   : > { %423 = vmatpush.msra.mxu0 %v315_v14  ;;  %1196 = vmatpush.msra.mxu2 %v315_v14  ;;  %v300_v45 = vld [vmem:[%s1490_s9 + $0xb0] sm:$0xff]  ;;  %v287_v46 = vld [vmem:[%s1490_s9 + $0x48] sm:$0xff]  ;;  %v301_v47 = vld [vmem:[%s1490_s9 + $0xb8] sm:$0xff] }
  0x23   : > { %515 = vmatpush.msra.mxu1 %v316_v15  ;;  %1210 = vmatpush.msra.mxu3 %v316_v15  ;;  %v288_v48 = vld [vmem:[%s1490_s9 + $0x50] sm:$0xff]  ;;  %v302_v49 = vld [vmem:[%s1490_s9 + $0xc0] sm:$0xff]  ;;  %v289_v50 = vld [vmem:[%s1490_s9 + $0x58] sm:$0xff] }
  0x24   : > { %424 = vmatpush.msra.mxu0 %v313_v16  ;;  %1197 = vmatpush.msra.mxu2 %v313_v16  ;;  %v290_v51 = vld [vmem:[%s1490_s9 + $0x60] sm:$0xff]  ;;  %v291_v52 = vld [vmem:[%s1490_s9 + $0x68] sm:$0xff]  ;;  %s271_s9 = scalar_lea.vmem [#allocation2], %s270_s21 }
  0x25   : > { %516 = vmatpush.msra.mxu1 %v314_v17  ;;  %1211 = vmatpush.msra.mxu3 %v314_v17  ;;  %s1071_s13 = sshll.u32 %s271_s9, 4  ;;  %s1072_s13 = int_to_ptr.vmem [resolvable:$true] %s1071_s13 }
  0x26   : > { %425 = vmatpush.msra.mxu0 %v311_v18  ;;  %1198 = vmatpush.msra.mxu2 %v311_v18 }
  0x27   : > { %517 = vmatpush.msra.mxu1 %v312_v19  ;;  %1212 = vmatpush.msra.mxu3 %v312_v19 }
  0x28   : > { %426 = vmatpush.msra.mxu0 %v309_v20  ;;  %1199 = vmatpush.msra.mxu2 %v309_v20 }
  0x29   : > { %518 = vmatpush.msra.mxu1 %v310_v21  ;;  %1213 = vmatpush.msra.mxu3 %v310_v21 }
  0x2a   : > { %427 = vmatpush.msra.mxu0 %v307_v22  ;;  %1200 = vmatpush.msra.mxu2 %v307_v22 }
  0x2b   : > { %519 = vmatpush.msra.mxu1 %v308_v23  ;;  %1214 = vmatpush.msra.mxu3 %v308_v23 }
  0x2c   : > { %428 = vmatpush.msra.mxu0 %v305_v24  ;;  %1201 = vmatpush.msra.mxu2 %v305_v24 }
  0x2d   : > { %520 = vmatpush.msra.mxu1 %v306_v25  ;;  %1215 = vmatpush.msra.mxu3 %v306_v25 }
  0x2e   : > { %429 = vmatpush.msra.mxu0 %v303_v26  ;;  %1202 = vmatpush.msra.mxu2 %v303_v26 }
  0x2f   : > { %521 = vmatpush.msra.mxu1 %v304_v27  ;;  %1134 = vmatmul.msk.f32.vlgmr.msra.gmra.mxu0 %vm331_vm1, %v278_v28 }
  0x30   : > { %1148 = vmatmul.msk.f32.vlgmr.msra.gmra.mxu2 %vm331_vm1, %v292_v29  ;;  %1160 = vmatmul.msk.f32.vlgmr.msra.gmra.mxu1 %vm331_vm1, %v278_v28 }
  0x31   : > { %1216 = vmatpush.msra.mxu3 %v304_v27 }
  0x32   : > { %1174 = vmatmul.msk.f32.vlgmr.msra.gmra.mxu3 %vm331_vm1, %v292_v29 }
  0x37   : > { %1135 = vmatmul.msk.f32.gmra.mxu0 %vm331_vm1, %v279_v30 }
  0x38   : > { %1149 = vmatmul.msk.f32.gmra.mxu2 %vm331_vm1, %v293_v31  ;;  %1161 = vmatmul.msk.f32.gmra.mxu1 %vm331_vm1, %v279_v30 }
  0x3a   : > { %1175 = vmatmul.msk.f32.gmra.mxu3 %vm331_vm1, %v293_v31 }
  0x3f   : > { %1136 = vmatmul.msk.f32.gmra.mxu0 %vm331_vm1, %v280_v32 }
  0x40   : > { %1162 = vmatmul.msk.f32.gmra.mxu1 %vm331_vm1, %v280_v32  ;;  %1150 = vmatmul.msk.f32.gmra.mxu2 %vm331_vm1, %v294_v33 }
  0x42   : > { %1176 = vmatmul.msk.f32.gmra.mxu3 %vm331_vm1, %v294_v33 }
  0x47   : > { %1137 = vmatmul.msk.f32.gmra.mxu0 %vm331_vm1, %v281_v34 }
  0x48   : > { %1163 = vmatmul.msk.f32.gmra.mxu1 %vm331_vm1, %v281_v34  ;;  %1151 = vmatmul.msk.f32.gmra.mxu2 %vm331_vm1, %v295_v35 }
  0x4a   : > { %1177 = vmatmul.msk.f32.gmra.mxu3 %vm331_vm1, %v295_v35 }
  0x4f   : > { %1138 = vmatmul.msk.f32.gmra.mxu0 %vm331_vm1, %v282_v36 }
  0x50   : > { %1164 = vmatmul.msk.f32.gmra.mxu1 %vm331_vm1, %v282_v36  ;;  %1152 = vmatmul.msk.f32.gmra.mxu2 %vm331_vm1, %v296_v37 }
  0x52   : > { %1178 = vmatmul.msk.f32.gmra.mxu3 %vm331_vm1, %v296_v37 }
  0x57   : > { %1139 = vmatmul.msk.f32.gmra.mxu0 %vm331_vm1, %v283_v38 }
  0x58   : > { %1165 = vmatmul.msk.f32.gmra.mxu1 %vm331_vm1, %v283_v38  ;;  %1153 = vmatmul.msk.f32.gmra.mxu2 %vm331_vm1, %v297_v39 }
  0x5a   : > { %1179 = vmatmul.msk.f32.gmra.mxu3 %vm331_vm1, %v297_v39 }
  0x5f   : > { %1140 = vmatmul.msk.f32.gmra.mxu0 %vm331_vm1, %v284_v40 }
  0x60   : > { %1166 = vmatmul.msk.f32.gmra.mxu1 %vm331_vm1, %v284_v40  ;;  %1154 = vmatmul.msk.f32.gmra.mxu2 %vm331_vm1, %v298_v41 }
  0x62   : > { %1180 = vmatmul.msk.f32.gmra.mxu3 %vm331_vm1, %v298_v41 }
  0x67   : > { %1141 = vmatmul.msk.f32.gmra.mxu0 %vm331_vm1, %v285_v42 }
  0x68   : > { %1167 = vmatmul.msk.f32.gmra.mxu1 %vm331_vm1, %v285_v42  ;;  %1155 = vmatmul.msk.f32.gmra.mxu2 %vm331_vm1, %v299_v43 }
  0x6a   : > { %1181 = vmatmul.msk.f32.gmra.mxu3 %vm331_vm1, %v299_v43 }
  0x6f   : > { %1142 = vmatmul.msk.f32.gmra.mxu0 %vm331_vm1, %v286_v44 }
  0x70   : > { %1168 = vmatmul.msk.f32.gmra.mxu1 %vm331_vm1, %v286_v44  ;;  %1156 = vmatmul.msk.f32.gmra.mxu2 %vm331_vm1, %v300_v45 }
  0x72   : > { %1182 = vmatmul.msk.f32.gmra.mxu3 %vm331_vm1, %v300_v45 }
  0x77   : > { %1143 = vmatmul.msk.f32.gmra.mxu0 %vm331_vm1, %v287_v46 }
  0x78   : > { %1169 = vmatmul.msk.f32.gmra.mxu1 %vm331_vm1, %v287_v46  ;;  %1157 = vmatmul.msk.f32.gmra.mxu2 %vm331_vm1, %v301_v47 }
  0x7a   : > { %1183 = vmatmul.msk.f32.gmra.mxu3 %vm331_vm1, %v301_v47  ;;  %v1767_v47 = vld [vmem:[%s2037_s2] ss:$0 sm:$0xff] }
  0x7f   : > { %1144 = vmatmul.msk.f32.gmra.mxu0 %vm331_vm1, %v288_v48 }
  0x80   : > { %1170 = vmatmul.msk.f32.gmra.mxu1 %vm331_vm1, %v288_v48  ;;  %1158 = vmatmul.msk.f32.gmra.mxu2 %vm331_vm1, %v302_v49 }
  0x82   : > { %1184 = vmatmul.msk.f32.gmra.mxu3 %vm331_vm1, %v302_v49 }
  0x87   : > { %1145 = vmatmul.msk.f32.gmra.mxu0 %vm331_vm1, %v289_v50 }
  0x88   : > { %1171 = vmatmul.msk.f32.gmra.mxu1 %vm331_vm1, %v289_v50 }
  0x8f   : > { %1146 = vmatmul.msk.f32.gmra.mxu0 %vm331_vm1, %v290_v51 }
  0x90   : > { %1172 = vmatmul.msk.f32.gmra.mxu1 %vm331_vm1, %v290_v51 }
  0x97   : > { %1147 = vmatmul.msk.f32.gmra.mxu0 %vm331_vm1, %v291_v52 }
  0x98   : > { %1173 = vmatmul.msk.f32.gmra.mxu1 %vm331_vm1, %v291_v52 }
  0xac   : > { %v1576_v53 = vpop.f32.mrf.mxu0 }
  0xad   : > { %2053 = vst [vmem:[#allocation5_spill] sm:$0xff] %v1576_v53  ;;  %v1578_v54 = vpop.f32.mrf.mxu1 }
  0xae   : > { %2054 = vst [vmem:[#allocation6_spill] sm:$0xff] %v1578_v54 }
  0xb3   : > { %v1580_v55 = vpop.f32.mrf.mxu2 }
  0xb4   : > { %651 = vrot.lane.b32.xlu1 %v1580_v55, %s1322_s20  ;;  %v1584_v56 = vpop.f32.mrf.mxu0 }
  0xb5   : > { %2055 = vst [vmem:[#allocation7_spill] sm:$0xff] %v1584_v56  ;;  %v1586_v57 = vpop.f32.mrf.mxu1  ;;  %v1588_v58 = vpop.f32.mrf.mxu3 }
  0xb6   : > { %2056 = vst [vmem:[#allocation8_spill] sm:$0xff] %v1586_v57 }
  0xbb   : > { %v1590_v59 = vpop.f32.mrf.mxu2 }
  0xbc   : > { %776 = vrot.lane.b32.xlu1 %v1588_v58, %s1322_s20  ;;  %653 = vrot.lane.b32.xlu0 %v1590_v59, %s1322_s20  ;;  %v1596_v60 = vpop.f32.mrf.mxu0 }
  0xbd   : > { %v1598_v61 = vpop.f32.mrf.mxu1  ;;  %v1600_v62 = vpop.f32.mrf.mxu3 }
  0xc3   : > { %v1602_v63 = vpop.f32.mrf.mxu2 }
  0xc4   : > { %2057 = vst [vmem:[#allocation9_spill] sm:$0xff] %v1602_v63  ;;  %778 = vrot.lane.b32.xlu0 %v1600_v62, %s1322_s20  ;;  %v1606_v0 = vpop.f32.mrf.mxu0 }
  0xc5   : > { %v1608_v1 = vpop.f32.mrf.mxu1  ;;  %v1610_v2 = vpop.f32.mrf.mxu3  ;;  %629 = vrot.lane.b32.xlu1 %v1606_v0, %s1322_s20 }
  0xc6   : > { %2058 = vst [vmem:[#allocation10_spill] sm:$0xff] %v1610_v2 }
  0xcb   : > { %v1614_v3 = vpop.f32.mrf.mxu2 }
  0xcc   : > { %2059 = vst [vmem:[#allocation11_spill] sm:$0xff] %v1614_v3  ;;  %754 = vrot.lane.b32.xlu0 %v1608_v1, %s1322_s20  ;;  %v1618_v4 = vpop.f32.mrf.mxu0 }
  0xcd   : > { %v1620_v5 = vpop.f32.mrf.mxu1  ;;  %v1622_v6 = vpop.f32.mrf.mxu3 }
  0xce   : > { %2060 = vst [vmem:[#allocation12_spill] sm:$0xff] %v1622_v6  ;;  %756 = vrot.lane.b32.xlu2 %v1620_v5, %s1322_s20 }
  0xd3   : > { %v1626_v7 = vpop.f32.mrf.mxu2 }
  0xd4   : > { %631 = vrot.lane.b32.xlu0 %v1618_v4, %s1322_s20  ;;  %v1630_v8 = vpop.f32.mrf.mxu0 }
  0xd5   : > { %v1632_v9 = vpop.f32.mrf.mxu1  ;;  %v1634_v10 = vpop.f32.mrf.mxu3 }
  0xd6   : > { %758 = vrot.lane.b32.xlu1 %v1632_v9, %s1322_s20  ;;  %633 = vrot.lane.b32.xlu2 %v1630_v8, %s1322_s20 }
  0xdb   : > { %v1640_v11 = vpop.f32.mrf.mxu2 }
  0xdc   : > { %v1642_v12 = vpop.f32.mrf.mxu0 }
  0xdd   : > { %v1644_v13 = vpop.f32.mrf.mxu1  ;;  %v1646_v14 = vpop.f32.mrf.mxu3 }
  0xde   : > { %786 = vrot.lane.b32.xlu1 %v1646_v14, %s1322_s20  ;;  %760 = vrot.lane.b32.xlu0 %v1644_v13, %s1322_s20 }
  0xdf   : > { %661 = vrot.lane.b32.xlu2 %v1640_v11, %s1322_s20 }
  0xe3   : > { %v1654_v15 = vpop.f32.mrf.mxu2 }
  0xe4   : > { %v1656_v16 = vpop.f32.mrf.mxu0 }
  0xe5   : > { %v1658_v17 = vpop.f32.mrf.mxu1  ;;  %v1660_v18 = vpop.f32.mrf.mxu3 }
  0xe6   : > { %788 = vrot.lane.b32.xlu0 %v1660_v18, %s1322_s20  ;;  %635 = vrot.lane.b32.xlu1 %v1642_v12, %s1322_s20 }
  0xe7   : > { %762 = vrot.lane.b32.xlu2 %v1658_v17, %s1322_s20 }
  0xeb   : > { %v1672_v21 = vpop.f32.mrf.mxu2 }
  0xec   : > { %v1668_v19 = vpop.f32.mrf.mxu0 }
  0xed   : > { %v1670_v20 = vpop.f32.mrf.mxu3  ;;  %v1680_v22 = vpop.f32.mrf.mxu1 }
  0xee   : > { %663 = vrot.lane.b32.xlu1 %v1654_v15, %s1322_s20  ;;  %637 = vrot.lane.b32.xlu0 %v1656_v16, %s1322_s20 }
  0xef   : > { %790 = vrot.lane.b32.xlu2 %v1670_v20, %s1322_s20 }
  0xf3   : > { %v1690_v24 = vpop.f32.mrf.mxu2 }
  0xf4   : > { %v1682_v23 = vpop.f32.mrf.mxu0 }
  0xf5   : > { %v1692_v25 = vpop.f32.mrf.mxu3  ;;  %v1694_v26 = vpop.f32.mrf.mxu1 }
  0xf6   : > { %764 = vrot.lane.b32.xlu1 %v1680_v22, %s1322_s20  ;;  %665 = vrot.lane.b32.xlu0 %v1672_v21, %s1322_s20 }
  0xf7   : > { %639 = vrot.lane.b32.xlu2 %v1668_v19, %s1322_s20 }
  0xfb   : > { %v1704_v28 = vpop.f32.mrf.mxu2 }
  0xfc   : > { %v1700_v27 = vpop.f32.mrf.mxu0 }
  0xfd   : > { %v1706_v29 = vpop.f32.mrf.mxu3  ;;  %v1708_v30 = vpop.f32.mrf.mxu1 }
  0xfe   : > { %792 = vrot.lane.b32.xlu1 %v1692_v25, %s1322_s20  ;;  %641 = vrot.lane.b32.xlu0 %v1682_v23, %s1322_s20 }
  0xff   : > { %667 = vrot.lane.b32.xlu2 %v1690_v24, %s1322_s20 }
 0x103   : > { %v1718_v32 = vpop.f32.mrf.mxu2 }
 0x104   : > { %v1716_v31 = vpop.f32.mrf.mxu0 }
 0x105   : > { %v1720_v33 = vpop.f32.mrf.mxu3  ;;  %v1728_v34 = vpop.f32.mrf.mxu1 }
 0x106   : > { %766 = vrot.lane.b32.xlu1 %v1694_v26, %s1322_s20  ;;  %794 = vrot.lane.b32.xlu0 %v1706_v29, %s1322_s20 }
 0x107   : > { %768 = vrot.lane.b32.xlu2 %v1708_v30, %s1322_s20 }
 0x10c   : > { %v1730_v35 = vpop.f32.mrf.mxu0 }
 0x10d   : > { %v1738_v36 = vpop.f32.mrf.mxu1 }
 0x10e   : > { %669 = vrot.lane.b32.xlu1 %v1704_v28, %s1322_s20  ;;  %671 = vrot.lane.b32.xlu0 %v1718_v32, %s1322_s20 }
 0x10f   : > { %796 = vrot.lane.b32.xlu2 %v1720_v33, %s1322_s20 }
 0x114   : > { %v1740_v37 = vpop.f32.mrf.mxu0 }
 0x115   : > { %v1748_v38 = vpop.f32.mrf.mxu1 }
 0x116   : > { %770 = vrot.lane.b32.xlu0 %v1728_v34, %s1322_s20  ;;  %643 = vrot.lane.b32.xlu1 %v1700_v27, %s1322_s20 }
 0x117   : > { %645 = vrot.lane.b32.xlu2 %v1716_v31, %s1322_s20 }
 0x11e   : > { %772 = vrot.lane.b32.xlu1 %v1738_v36, %s1322_s20  ;;  %647 = vrot.lane.b32.xlu0 %v1730_v35, %s1322_s20 }
 0x11f   : > { %649 = vrot.lane.b32.xlu2 %v1740_v37, %s1322_s20 }
 0x126   : > { %v652_v39 = vpop.permute.xlu1 %651  ;;  %752 = vrot.lane.b32.xlu1 %v1598_v61, %s1322_s20  ;;  %659 = vrot.lane.b32.xlu0 %v1626_v7, %s1322_s20 }
 0x127   : > { %774 = vrot.lane.b32.xlu2 %v1748_v38, %s1322_s20  ;;  %v712_v45 = vmax.f32 %v1580_v55, %v652_v39 }
 0x128   : > { %v757_v40 = vpop.permute.xlu2 %756 }
 0x12e   : > { %v777_v41 = vpop.permute.xlu1 %776  ;;  %v654_v42 = vpop.permute.xlu0 %653  ;;  %657 = vrot.lane.b32.xlu1 %v1614_v3, %s1322_s20  ;;  %625 = vrot.lane.b32.xlu0 %v1584_v56, %s1322_s20 }
 0x12f   : > { %627 = vrot.lane.b32.xlu2 %v1596_v60, %s1322_s20  ;;  %v837_v44 = vmax.f32 %v1588_v58, %v777_v41  ;;  %v713_v49 = vmax.f32 %v1590_v59, %v654_v42  ;;  %v942_v41 = vld [vmem:[%s2038_s3 + $0x78] sm:$0xff] }
 0x130   : > { %v634_v43 = vpop.permute.xlu2 %633 }
 0x131   : > { %v862_v46 = vmax.f32 %v712_v45, %v837_v44 }
 0x133   : > { %v891_v55 = vadd.f32 %v1767_v47, %v862_v46 }
 0x135   : > { %v916_v45 = vmax.f32 %v891_v55, 0.0 }
 0x136   : > { %v779_v48 = vpop.permute.xlu0 %778  ;;  %623 = vrot.lane.b32.xlu1 %v1576_v53, %s1322_s20  ;;  %782 = vrot.lane.b32.xlu0 %v1622_v6, %s1322_s20 }
 0x137   : > { %v838_v50 = vmax.f32 %v1600_v62, %v779_v48  ;;  %784 = vrot.lane.b32.xlu2 %v1634_v10, %s1322_s20  ;;  %v630_v39 = vpop.permute.xlu1 %629  ;;  %v941_v62 = vld [vmem:[%s2038_s3 + $0x70] sm:$0xff] }
 0x138   : > { %v701_v42 = vmax.f32 %v1606_v0, %v630_v39 }
 0x139   : > { %v863_v51 = vmax.f32 %v713_v49, %v838_v50  ;;  %v1777_v52 = vpop.permute.xlu2 %661 }
 0x13b   : > { %v892_v58 = vadd.f32 %v1767_v47, %v863_v51  ;;  %v966_v51 = vmul.f32 %v941_v62, %v916_v45 }
 0x13d   : > { %v917_v44 = vmax.f32 %v892_v58, 0.0  ;;  %v827_v58 = vmax.f32 %v1620_v5, %v757_v40 }
 0x13e   : > { %v755_v59 = vpop.permute.xlu0 %754  ;;  %780 = vrot.lane.b32.xlu1 %v1610_v2, %s1322_s20  ;;  %748 = vrot.lane.b32.xlu0 %v1578_v54, %s1322_s20 }
 0x13f   : > { %v826_v46 = vmax.f32 %v1608_v1, %v755_v59  ;;  %750 = vrot.lane.b32.xlu2 %v1586_v57, %s1322_s20  ;;  %v967_v48 = vmul.f32 %v942_v41, %v917_v44  ;;  %v703_v1 = vmax.f32 %v1630_v8, %v634_v43 }
 0x141   : > { %v1795_v49 = vmax.f32 %v701_v42, %v826_v46  ;;  %v1797_v50 = vpop.permute.xlu2 %762  ;;  %985 = vmatpush.msrb.mxu2 %v967_v48 }
 0x143   : > { %2061 = vst [vmem:[#allocation13_spill] sm:$0xff] %v1795_v49  ;;  %986 = vmatpush.msrb.mxu2 %v966_v51 }
 0x146   : > { %v632_v55 = vpop.permute.xlu0 %631 }
 0x147   : > { %v702_v54 = vmax.f32 %v1618_v4, %v632_v55  ;;  %655 = vrot.lane.b32.xlu2 %v1602_v63, %s1322_s20  ;;  %s1278_s20 = scalar_lea.hbm %s2042_s7, 2 }
 0x148   : > { %v759_v0 = vpop.permute.xlu1 %758  ;;  %p1280_p1 = scmp.lt.s32.totalorder %s1278_s20, %s1274_s18 }
 0x149   : > { %v1804_v39 = vmax.f32 %v702_v54, %v827_v58  ;;  %v828_v41 = vmax.f32 %v1632_v9, %v759_v0  ;;  %v791_v44 = vpop.permute.xlu2 %790 }
 0x14a   : > { %v844_v2 = vmax.f32 %v1670_v20, %v791_v44  ;;  %p1281_p2 = por %p1280_p1, %p1279_p0 }
 0x14b   : > { %2062 = vst [vmem:[#allocation14_spill] sm:$0xff] %v1804_v39  ;;  %v1807_v59 = vmax.f32 %v703_v1, %v828_v41 }
 0x14c   : > { %p1282_p3 = pnand %p1281_p2, %p1277_p13 }
 0x150   : > { %v787_v45 = vpop.permute.xlu1 %786  ;;  %v761_v62 = vpop.permute.xlu0 %760 }
 0x151   : > { %v1809_v42 = vpop.permute.xlu2 %639  ;;  %v829_v4 = vmax.f32 %v1644_v13, %v761_v62 }
 0x158   : > { %v789_v5 = vpop.permute.xlu0 %788  ;;  %v636_v40 = vpop.permute.xlu1 %635 }
 0x159   : > { %v704_v46 = vmax.f32 %v1642_v12, %v636_v40  ;;  %v668_v48 = vpop.permute.xlu2 %667 }
 0x15b   : > { %v1813_v51 = vmax.f32 %v704_v46, %v829_v4  ;;  %v720_v4 = vmax.f32 %v1690_v24, %v668_v48  ;;  %v842_v24 = vmax.f32 %v1646_v14, %v787_v45 }
 0x160   : > { %v664_v54 = vpop.permute.xlu1 %663  ;;  %v1815_v8 = vpop.permute.xlu0 %637 }
 0x161   : > { %v1817_v9 = vpop.permute.xlu2 %768  ;;  %v718_v53 = vmax.f32 %v1654_v15, %v664_v54  ;;  %v717_v54 = vmax.f32 %v1640_v11, %v1777_v52 }
 0x168   : > { %v1819_v43 = vpop.permute.xlu1 %764  ;;  %v666_v55 = vpop.permute.xlu0 %665 }
 0x169   : > { %v797_v58 = vpop.permute.xlu2 %796  ;;  %v719_v46 = vmax.f32 %v1672_v21, %v666_v55  ;;  %v843_v21 = vmax.f32 %v1660_v18, %v789_v5 }
 0x16a   : > { %v847_v63 = vmax.f32 %v1720_v33, %v797_v58  ;;  %v949_v58 = vld [vmem:[%s2038_s3 + $0xb0] sm:$0xff] }
 0x16b   : > { %v869_v44 = vmax.f32 %v719_v46, %v844_v2  ;;  %v951_v2 = vld [vmem:[%s2038_s3 + $0xc0] sm:$0xff] }
 0x170   : > { %v793_v0 = vpop.permute.xlu1 %792  ;;  %v1821_v1 = vpop.permute.xlu0 %641 }
 0x171   : > { %v1823_v41 = vpop.permute.xlu2 %645  ;;  %v845_v40 = vmax.f32 %v1692_v25, %v793_v0 }
 0x173   : > { %v870_v49 = vmax.f32 %v720_v4, %v845_v40  ;;  %v948_v4 = vld [vmem:[%s2038_s3 + $0xa8] sm:$0xff] }
 0x175   : > { %v899_v14 = vadd.f32 %v1767_v47, %v870_v49 }
 0x178   : > { %v1825_v13 = vpop.permute.xlu1 %766  ;;  %v795_v12 = vpop.permute.xlu0 %794 }
 0x179   : > { %v650_v62 = vpop.permute.xlu2 %649  ;;  %v846_v56 = vmax.f32 %v1706_v29, %v795_v12  ;;  %v868_v29 = vmax.f32 %v718_v53, %v843_v21 }
 0x17a   : > { %v711_v20 = vmax.f32 %v1740_v37, %v650_v62 }
 0x17b   : > { %v897_v52 = vadd.f32 %v1767_v47, %v868_v29 }
 0x17d   : > { %v922_v46 = vmax.f32 %v897_v52, 0.0 }
 0x180   : > { %v670_v6 = vpop.permute.xlu1 %669  ;;  %v672_v3 = vpop.permute.xlu0 %671 }
 0x181   : > { %v721_v57 = vmax.f32 %v1704_v28, %v670_v6  ;;  %v722_v39 = vmax.f32 %v1718_v32, %v672_v3  ;;  %v775_v25 = vpop.permute.xlu2 %774  ;;  %v867_v28 = vmax.f32 %v717_v54, %v842_v24 }
 0x182   : > { %v836_v15 = vmax.f32 %v1748_v38, %v775_v25  ;;  %v950_v38 = vld [vmem:[%s2038_s3 + $0xb8] sm:$0xff]  ;;  %v709_v25 = vmax.f32 %v1716_v31, %v1823_v41  ;;  %v831_v31 = vmax.f32 %v1680_v22, %v1819_v43 }
 0x183   : > { %v871_v33 = vmax.f32 %v721_v57, %v846_v56  ;;  %v872_v48 = vmax.f32 %v722_v39, %v847_v63  ;;  %v940_v56 = vld [vmem:[%s2038_s3 + $0x68] sm:$0xff]  ;;  %v898_v63 = vadd.f32 %v1767_v47, %v869_v44  ;;  %v924_v39 = vmax.f32 %v899_v14, 0.0 }
 0x184   : > { %v861_v55 = vmax.f32 %v711_v20, %v836_v15  ;;  %v896_v0 = vadd.f32 %v1767_v47, %v867_v28  ;;  %v833_v15 = vmax.f32 %v1708_v30, %v1817_v9  ;;  %v832_v44 = vmax.f32 %v1694_v26, %v1825_v13 }
 0x185   : > { %v901_v6 = vadd.f32 %v1767_v47, %v872_v48  ;;  %v900_v3 = vadd.f32 %v1767_v47, %v871_v33  ;;  %v923_v40 = vmax.f32 %v898_v63, 0.0  ;;  %v974_v21 = vmul.f32 %v949_v58, %v924_v39  ;;  %v936_v39 = vld [vmem:[%s2038_s3 + $0x48] sm:$0xff] }
 0x186   : > { %v890_v18 = vadd.f32 %v1767_v47, %v861_v55  ;;  %v921_v20 = vmax.f32 %v896_v0, 0.0  ;;  %v707_v55 = vmax.f32 %v1682_v23, %v1821_v1  ;;  %v706_v13 = vmax.f32 %v1668_v19, %v1809_v42  ;;  %v939_v19 = vld [vmem:[%s2038_s3 + $0x60] sm:$0xff] }
 0x187   : > { %v926_v57 = vmax.f32 %v901_v6, 0.0  ;;  %v925_v53 = vmax.f32 %v900_v3, 0.0  ;;  %v973_v48 = vmul.f32 %v948_v4, %v923_v40  ;;  %v705_v3 = vmax.f32 %v1656_v16, %v1815_v8  ;;  %v935_v0 = vld [vmem:[%s2038_s3 + $0x40] sm:$0xff]  ;;  %v945_v40 = vld [vmem:[%s2038_s3 + $0x90] sm:$0xff] }
 0x188   : > { %v771_v11 = vpop.permute.xlu0 %770  ;;  %v644_v32 = vpop.permute.xlu1 %643  ;;  %v915_v37 = vmax.f32 %v890_v18, 0.0  ;;  %v857_v22 = vmax.f32 %v707_v55, %v832_v44  ;;  %v856_v28 = vmax.f32 %v706_v13, %v831_v31  ;;  %v882_v4 = vadd.f32 %v1767_v47, %v1807_v59  ;;  %v2063_v44 = vld [vmem:[#allocation14_spill] sm:$0xff]  ;;  %v2064_v59 = vld [vmem:[#allocation8_spill] sm:$0xff]  ;;  %v2065_v31 = vld [vmem:[#allocation7_spill] sm:$0xff] }
 0x189   : > { %v976_v49 = vmul.f32 %v951_v2, %v926_v57  ;;  %v1857_v45 = vpop.permute.xlu2 %627  ;;  %v834_v12 = vmax.f32 %v1728_v34, %v771_v11  ;;  %v975_v62 = vmul.f32 %v950_v38, %v925_v53  ;;  %v708_v24 = vmax.f32 %v1700_v27, %v644_v32  ;;  %v947_v34 = vld [vmem:[%s2038_s3 + $0xa0] sm:$0xff]  ;;  %v946_v27 = vld [vmem:[%s2038_s3 + $0x98] sm:$0xff]  ;;  %v937_v32 = vld [vmem:[%s2038_s3 + $0x50] sm:$0xff] }
 0x18a   : > { %v965_v5 = vmul.f32 %v940_v56, %v915_v37  ;;  %v972_v29 = vmul.f32 %v947_v34, %v922_v46  ;;  %v971_v6 = vmul.f32 %v946_v27, %v921_v20  ;;  %v886_v18 = vadd.f32 %v1767_v47, %v857_v22  ;;  %v934_v20 = vld [vmem:[%s2038_s3 + $0x38] sm:$0xff]  ;;  %v931_v22 = vld [vmem:[%s2038_s3 + $0x20] sm:$0xff] }
 0x18b   : > { %1012 = vmatpush.msrb.mxu3 %v976_v49  ;;  %v859_v33 = vmax.f32 %v709_v25, %v834_v12  ;;  %v858_v30 = vmax.f32 %v708_v24, %v833_v15  ;;  %v907_v55 = vmax.f32 %v882_v4, 0.0 }
 0x18c   : > { %987 = vmatpush.msrb.mxu2 %v965_v5  ;;  %v911_v52 = vmax.f32 %v886_v18, 0.0 }
 0x18d   : > { %1013 = vmatpush.msrb.mxu3 %v975_v62  ;;  %v888_v14 = vadd.f32 %v1767_v47, %v859_v33  ;;  %v887_v1 = vadd.f32 %v1767_v47, %v858_v30  ;;  %v881_v33 = vadd.f32 %v1767_v47, %v2063_v44  ;;  %v2066_v30 = vld [vmem:[#allocation13_spill] sm:$0xff] }
 0x18f   : > { %1014 = vmatpush.msrb.mxu3 %v974_v21  ;;  %v913_v8 = vmax.f32 %v888_v14, 0.0  ;;  %v912_v11 = vmax.f32 %v887_v1, 0.0  ;;  %v2067_v1 = vld [vmem:[#allocation11_spill] sm:$0xff] }
 0x190   : > { %v773_v41 = vpop.permute.xlu1 %772  ;;  %v648_v54 = vpop.permute.xlu0 %647 }
 0x191   : > { %v835_v9 = vmax.f32 %v1738_v36, %v773_v41  ;;  %v710_v26 = vmax.f32 %v1730_v35, %v648_v54  ;;  %1015 = vmatpush.msrb.mxu3 %v973_v48  ;;  %v785_v23 = vpop.permute.xlu2 %784  ;;  %v830_v36 = vmax.f32 %v1658_v17, %v1797_v50  ;;  %v938_v17 = vld [vmem:[%s2038_s3 + $0x58] sm:$0xff]  ;;  %v885_v50 = vadd.f32 %v1767_v47, %v856_v28  ;;  %v933_v41 = vld [vmem:[%s2038_s3 + $0x30] sm:$0xff] }
 0x192   : > { %v841_v57 = vmax.f32 %v1634_v10, %v785_v23  ;;  %v963_v38 = vmul.f32 %v938_v17, %v913_v8  ;;  %v962_v58 = vmul.f32 %v937_v32, %v912_v11  ;;  %v944_v32 = vld [vmem:[%s2038_s3 + $0x88] sm:$0xff] }
 0x193   : > { %v860_v43 = vmax.f32 %v710_v26, %v835_v9  ;;  %1016 = vmatpush.msrb.mxu3 %v972_v29  ;;  %v855_v16 = vmax.f32 %v705_v3, %v830_v36  ;;  %v910_v5 = vmax.f32 %v885_v50, 0.0  ;;  %v880_v9 = vadd.f32 %v1767_v47, %v2066_v30  ;;  %v932_v26 = vld [vmem:[%s2038_s3 + $0x28] sm:$0xff] }
 0x195   : > { %1017 = vmatpush.msrb.mxu3 %v971_v6  ;;  %v889_v35 = vadd.f32 %v1767_v47, %v860_v43  ;;  %v884_v49 = vadd.f32 %v1767_v47, %v855_v16  ;;  %v960_v34 = vmul.f32 %v935_v0, %v910_v5  ;;  %v906_v6 = vmax.f32 %v881_v33, 0.0  ;;  %v2068_v16 = vld [vmem:[#allocation12_spill] sm:$0xff] }
 0x196   : > { %v957_v43 = vmul.f32 %v932_v26, %v907_v55  ;;  %v905_v14 = vmax.f32 %v880_v9, 0.0  ;;  %v1033_v9 = vld [vmem:[%s2041_s6] sm:$0x1] }
 0x197   : > { %v914_v42 = vmax.f32 %v889_v35, 0.0  ;;  %v909_v25 = vmax.f32 %v884_v49, 0.0  ;;  %v930_v35 = vld [vmem:[%s2038_s3 + $0x18] sm:$0xff]  ;;  %v956_v8 = vmul.f32 %v931_v22, %v906_v6 }
 0x198   : > { %v753_v2 = vpop.permute.xlu1 %752  ;;  %v660_v56 = vpop.permute.xlu0 %659  ;;  %v955_v17 = vmul.f32 %v930_v35, %v905_v14 }
 0x199   : > { %v716_v53 = vmax.f32 %v1626_v7, %v660_v56  ;;  %v964_v63 = vmul.f32 %v939_v19, %v914_v42  ;;  %v883_v7 = vadd.f32 %v1767_v47, %v1813_v51  ;;  %v825_v10 = vmax.f32 %v1598_v61, %v753_v2  ;;  %v751_v62 = vpop.permute.xlu2 %750  ;;  %v929_v2 = vld [vmem:[%s2038_s3 + $0x10] sm:$0xff] }
 0x19a   : > { %v700_v51 = vmax.f32 %v1596_v60, %v1857_v45  ;;  %v961_v61 = vmul.f32 %v936_v39, %v911_v52  ;;  %v824_v27 = vmax.f32 %v2064_v59, %v751_v62  ;;  %v959_v29 = vmul.f32 %v934_v20, %v909_v25  ;;  %v2069_v52 = vld [vmem:[#allocation9_spill] sm:$0xff]  ;;  %v977_v25 = vld [vmem:[%s2039_s4] sm:$0x3]  ;;  %v1031_v59 = vld [vmem:[%s2040_s5 + $0x30] sm:$0xff] }
 0x19b   : > { %v866_v37 = vmax.f32 %v716_v53, %v841_v57  ;;  %988 = vmatpush.msrb.mxu2 %v964_v63  ;;  %v908_v15 = vmax.f32 %v883_v7, 0.0  ;;  %v928_v57 = vld [vmem:[%s2038_s3 + $0x8] sm:$0xff]  ;;  %v980_v44 = vperm.slane %v977_v25, 1 }
 0x19c   : > { %v850_v48 = vmax.f32 %v700_v51, %v825_v10  ;;  %v2070_v7 = vld [vmem:[#allocation5_spill] sm:$0xff] }
 0x19d   : > { %989 = vmatpush.msrb.mxu2 %v963_v38  ;;  %v895_v12 = vadd.f32 %v1767_v47, %v866_v37  ;;  %v958_v13 = vmul.f32 %v933_v41, %v908_v15  ;;  %v979_v15 = vperm.slane %v977_v25, 0  ;;  %v1026_v41 = vld [vmem:[%s2040_s5 + $0x8] sm:$0xff] }
 0x19e   : > { %v879_v3 = vadd.f32 %v1767_v47, %v850_v48 }
 0x19f   : > { %990 = vmatpush.msrb.mxu2 %v962_v58  ;;  %v920_v46 = vmax.f32 %v895_v12, 0.0  ;;  %v2071_v58 = vld [vmem:[#allocation10_spill] sm:$0xff] }
 0x1a0   : > { %v658_v24 = vpop.permute.xlu1 %657  ;;  %v626_v21 = vpop.permute.xlu0 %625  ;;  %v904_v18 = vmax.f32 %v879_v3, 0.0  ;;  %v2072_v12 = vld [vmem:[#allocation6_spill] sm:$0xff] }
 0x1a1   : > { %v699_v60 = vmax.f32 %v2065_v31, %v626_v21  ;;  %991 = vmatpush.msrb.mxu2 %v961_v61  ;;  %v970_v45 = vmul.f32 %v945_v40, %v920_v46  ;;  %v715_v19 = vmax.f32 %v2067_v1, %v658_v24  ;;  %v656_v53 = vpop.permute.xlu2 %655  ;;  %v927_v24 = vld [vmem:[%s2038_s3] sm:$0xff] }
 0x1a2   : > { %v954_v63 = vmul.f32 %v929_v2, %v904_v18  ;;  %v714_v49 = vmax.f32 %v2069_v52, %v656_v53  ;;  %v943_v21 = vld [vmem:[%s2038_s3 + $0x80] sm:$0xff] }
 0x1a3   : > { %v849_v54 = vmax.f32 %v699_v60, %v824_v27  ;;  %992 = vmatpush.msrb.mxu2 %v960_v34  ;;  %1018 = vmatpush.msrb.mxu3 %v970_v45  ;;  %v1030_v27 = vld [vmem:[%s2040_s5 + $0x28] sm:$0xff]  ;;  %v1029_v31 = vld [vmem:[%s2040_s5 + $0x20] sm:$0xff]  ;;  %v1028_v60 = vld [vmem:[%s2040_s5 + $0x18] sm:$0xff] }
 0x1a4   : > { %v1027_v45 = vld [vmem:[%s2040_s5 + $0x10] sm:$0xff] }
 0x1a5   : > { %993 = vmatpush.msrb.mxu2 %v959_v29  ;;  %v878_v28 = vadd.f32 %v1767_v47, %v849_v54  ;;  %v1025_v54 = vld [vmem:[%s2040_s5] sm:$0xff] }
 0x1a7   : > { %994 = vmatpush.msrb.mxu2 %v958_v13  ;;  %v903_v50 = vmax.f32 %v878_v28, 0.0 }
 0x1a8   : > { %v624_v23 = vpop.permute.xlu1 %623  ;;  %v783_v36 = vpop.permute.xlu0 %782 }
 0x1a9   : > { %v840_v42 = vmax.f32 %v2068_v16, %v783_v36  ;;  %995 = vmatpush.msrb.mxu2 %v957_v43  ;;  %v953_v37 = vmul.f32 %v928_v57, %v903_v50  ;;  %v698_v10 = vmax.f32 %v2070_v7, %v624_v23 }
 0x1ab   : > { %v865_v56 = vmax.f32 %v715_v19, %v840_v42  ;;  %996 = vmatpush.msrb.mxu2 %v956_v8 }
 0x1ad   : > { %997 = vmatpush.msrb.mxu2 %v955_v17  ;;  %v894_v11 = vadd.f32 %v1767_v47, %v865_v56 }
 0x1af   : > { %998 = vmatpush.msrb.mxu2 %v954_v63  ;;  %v919_v38 = vmax.f32 %v894_v11, 0.0 }
 0x1b0   : > { %v781_v39 = vpop.permute.xlu1 %780  ;;  %v749_v5 = vpop.permute.xlu0 %748 }
 0x1b1   : > { %v839_v0 = vmax.f32 %v2071_v58, %v781_v39  ;;  %v823_v62 = vmax.f32 %v2072_v12, %v749_v5  ;;  %999 = vmatpush.msrb.mxu2 %v953_v37  ;;  %v969_v40 = vmul.f32 %v944_v32, %v919_v38 }
 0x1b3   : > { %v864_v4 = vmax.f32 %v714_v49, %v839_v0  ;;  %v848_v51 = vmax.f32 %v698_v10, %v823_v62  ;;  %1019 = vmatpush.msrb.mxu3 %v969_v40 }
 0x1b5   : > { %v877_v61 = vadd.f32 %v1767_v47, %v848_v51  ;;  %v893_v46 = vadd.f32 %v1767_v47, %v864_v4  ;;  %v1032_v47 = vld [vmem:[%s2040_s5 + $0x38] sm:$0xff] }
 0x1b7   : > { %v902_v34 = vmax.f32 %v877_v61, 0.0  ;;  %v918_v20 = vmax.f32 %v893_v46, 0.0 }
 0x1b9   : > { %v952_v33 = vmul.f32 %v927_v24, %v902_v34  ;;  %v968_v48 = vmul.f32 %v943_v21, %v918_v20 }
 0x1bb   : > { %1000 = vmatpush.msrb.mxu2 %v952_v33  ;;  %1020 = vmatpush.msrb.mxu3 %v968_v48 }
 0x1bc   : > { %1001 = vmatmul.f32.vlgmr.msrb.gmra.mxu2 %v979_v15  ;;  %1185 = vmatmul.msk.f32.vlgmr.msrb.gmra.mxu3 %vm982_vm2, %v980_v44 }
 0x1bd   : > { %1046 = vmatpush.msra.mxu3 %v1032_v47 }
 0x1bf   : > { %1047 = vmatpush.msra.mxu3 %v1031_v59 }
 0x1c1   : > { %1048 = vmatpush.msra.mxu3 %v1030_v27 }
 0x1c3   : > { %1049 = vmatpush.msra.mxu3 %v1029_v31 }
 0x1c5   : > { %1050 = vmatpush.msra.mxu3 %v1028_v60 }
 0x1c7   : > { %1051 = vmatpush.msra.mxu3 %v1027_v45 }
 0x1c9   : > { %1052 = vmatpush.msra.mxu3 %v1026_v41 }
 0x1cb   : > { %1053 = vmatpush.msra.mxu3 %v1025_v54 }
 0x23f   : > { %v1002_v29 = vpop.f32.mrf.mxu2  ;;  %v1022_v55 = vpop.f32.mrf.mxu3 }
 0x240   : > { %v1023_v30 = vadd.f32 %v1022_v55, %v1002_v29 }
 0x242   : > { %1186 = vmatmul.msk.f32.vlgmr.msra.gmra.mxu3 %vm1034_vm3, %v1023_v30 }
 0x2c5   : > { %v1055_v26 = vpop.f32.mrf.mxu3 }
 0x2c6   : > { %v1056_v13 = vadd.f32 %v1055_v26, %v1033_v9 }
 0x2c8   : > { %1059 = vst.msk [vmem:[%s271_s9] sm:$0x1] %vm1058_vm4, %v1056_v13 }
 0x2c9   : > { %1285 = shalt.err (!%p1282_p3)
}
 0x2ca   : > { %1217 = dma.vmem_to_hbm [thread:$0]  (%p1401_p5), %s1072_s13, 16, %s1074_s14, %s1061_s15  }
 0x2cb PF: > { %p1223_p4 = scmp.ge.s32.totalorder %s1320_s27, 2  ;;  %s1085_s21 = sand.u32 1, %s1308_s24  }
 0x2cc   : > { %s1086_s29 = scalar_lea.sflag [#allocation3], %s1085_s21 }
 0x2cd   : > { %p1220_p7 = pnand %p1223_p4, %p1405_p6 }
 0x2cf   : > { %p1221_p8 = pneg %p1220_p7 }
 0x2d1   : > { %1303 = dma.done.wait (%p1221_p8), %s1086_s29, 16  }
 0x2d2   : > { %1305 = vsyncadd (%p1221_p8), %s1086_s29, 4294967280  ;;  %p17_p9 = scmp.ge.s32.totalorder %s1388_s30, 4   ;;  %s2073_s24 = smov %s1312_s25 }
 0x2d3   : > { %s2074_s25 = smov %s1316_s26  ;;  %s2075_s26 = smov %s1399_s10 }
 0x2d4   : > { %s2076_s27 = smov %s1388_s30  ;;  %19 = sbr.rel (!%p17_p9) target bundleno = 3 (0x3), region = 83 }
 0x2d9   :  { %1091 = vsyncpa [#allocation3], 1 }
 0x2da   :  { %1093 = vsyncpa [#allocation3 + $0x1], 1 }

</bundles_post_ra>
